<compile_context>
chip_gen: v6e
topology: v6e:2x2x1
jax: 0.10.0
libtpu: 0.0.40
codegen_flags: <defaults>
</compile_context>

<pallas_src>
import jax
import jax.numpy as jnp
from jax.experimental import pallas as pl
from jax.experimental.pallas import tpu as pltpu

_LANE = 128


# ----------------------------------------------------------------------------
# Kernels
# ----------------------------------------------------------------------------
def _invconv_masked_kernel(w_ref, x_ref, m_ref, o_ref):
    # w_ref: (C, C) f32 dense block-permuted weight (constant block index).
    # x_ref: (BB, C, TN) slab of x in native layout.
    # m_ref: (BB, 1, TN) time mask, broadcast over channels in-kernel.
    # o_ref: (BB, C, TN)
    w = w_ref[...]
    for i in range(x_ref.shape[0]):            # BB is static -> unrolled
        z = jnp.dot(w, x_ref[i], preferred_element_type=jnp.float32)
        o_ref[i] = (z * m_ref[i]).astype(o_ref.dtype)


def _invconv_kernel(w_ref, x_ref, o_ref):
    w = w_ref[...]
    for i in range(x_ref.shape[0]):
        z = jnp.dot(w, x_ref[i], preferred_element_type=jnp.float32)
        o_ref[i] = z.astype(o_ref.dtype)


# ----------------------------------------------------------------------------
# Tiling / VMEM budgeting
# ----------------------------------------------------------------------------
def _vmem_budget():
    """Usable VMEM budget for this kernel, safe on v5e/v6e (128 MiB) and v7x (64 MiB)."""
    cap = 64 << 20  # conservative default (v7x per-TensorCore)
    try:
        cap = int(pltpu.get_tpu_info().vmem_capacity_bytes)
    except Exception:
        pass
    cap = max(cap, 48 << 20)
    return min(cap - (8 << 20), 100 << 20)


def _pick_tiles(b, c, t, itemsize, budget):
    """Pick (BB, TN): batch rows per block and lane-tile width (mult of 128 or == T)."""
    # Per-T-column VMEM cost of one grid step (per batch row in the block):
    # x + out double-buffered in x.dtype, f32 matmul intermediate, mask (f32, dbl-buf).
    per_col = 4 * c * itemsize + 4 * c + 2 * 4
    fixed = 2 * c * c * 4 + (4 << 20)          # f32 weight (double-buffered) + scratch
    avail = max(budget - fixed, 2 << 20)

    tn_target = (8 << 20) // max(1, c * itemsize)      # ~8 MiB of x per step
    tn = max(_LANE, (min(tn_target, avail // per_col) // _LANE) * _LANE)

    if t <= tn:
        # Whole T fits in one lane tile (block last dim == full dim: always legal).
        # Block several batch rows per step so each DMA still moves a few MiB.
        tn = t
        rows_target = max(1, (4 << 20) // max(1, c * t * itemsize))
        rows_fit = max(1, avail // max(1, per_col * t))
        bb = int(min(b, rows_target, rows_fit))
    else:
        bb = 1

    # Ensure >= 2 parallel grid steps where possible so both v7x TensorCores
    # get work (no effect on single-TC v5e/v6e).
    if pl.cdiv(b, bb) * pl.cdiv(t, tn) < 2:
        if bb > 1:
            bb = (bb + 1) // 2
        elif t > _LANE:
            tn = max(_LANE, pl.cdiv(pl.cdiv(t, 2), _LANE) * _LANE)
    return bb, tn


def _invconv_apply(w_full, x, mask3=None):
    """w_full:(C,C) f32, x:(B,C,T), optional mask3:(B,1,T) -> z:(B,C,T)."""
    b, c, t = x.shape
    itemsize = jnp.dtype(x.dtype).itemsize
    budget = _vmem_budget()
    bb, tn = _pick_tiles(b, c, t, itemsize, budget)
    n_b, n_t = pl.cdiv(b, bb), pl.cdiv(t, tn)

    # Per-step working set: double-buffered x/out/mask tiles, f32 weight
    # buffers, f32 matmul intermediates, plus compiler scratch headroom.
    need = (4 * bb * c * tn * itemsize       # x + out, double-buffered
            + 2 * bb * tn * 4                # mask, double-buffered (<= f32)
            + 2 * c * c * 4                  # weight, f32
            + bb * c * tn * 4                # f32 matmul intermediates
            + (4 << 20))
    vmem_limit = int(min(budget, max(32 << 20, need)))

    w_spec = pl.BlockSpec((c, c), lambda bi, ti: (0, 0))
    x_spec = pl.BlockSpec((bb, c, tn), lambda bi, ti: (bi, 0, ti))
    o_spec = pl.BlockSpec((bb, c, tn), lambda bi, ti: (bi, 0, ti))
    compiler_params = pltpu.CompilerParams(
        dimension_semantics=("parallel", "parallel"),
        vmem_limit_bytes=vmem_limit)
    out_shape = jax.ShapeDtypeStruct((b, c, t), x.dtype)

    if mask3 is None:
        return pl.pallas_call(
            _invconv_kernel,
            out_shape=out_shape,
            grid_spec=pltpu.PrefetchScalarGridSpec(
                num_scalar_prefetch=0, grid=(n_b, n_t),
                in_specs=[w_spec, x_spec], out_specs=o_spec),
            compiler_params=compiler_params,
        )(w_full, x)

    m_spec = pl.BlockSpec((bb, 1, tn), lambda bi, ti: (bi, 0, ti))
    return pl.pallas_call(
        _invconv_masked_kernel,
        out_shape=out_shape,
        grid_spec=pltpu.PrefetchScalarGridSpec(
            num_scalar_prefetch=0, grid=(n_b, n_t),
            in_specs=[w_spec, x_spec, m_spec], out_specs=o_spec),
        compiler_params=compiler_params,
    )(w_full, x, mask3)


# ----------------------------------------------------------------------------
# Weight folding (tiny, plain JAX)
# ----------------------------------------------------------------------------
def _dense_weight(w, channels, n_split):
    """Fold the channel-split permutation into W: W_full = P^T (W ⊗ I_g) P."""
    ns = n_split
    g = channels // ns
    ns2 = ns // 2
    s = jnp.arange(ns)
    h, k = s // ns2, s % ns2
    # chan[s*g + gi] = source channel feeding split-row s of group gi.
    chan = (h[:, None] * (g * ns2) + jnp.arange(g)[None, :] * ns2
            + k[:, None]).reshape(-1)
    inv = jnp.zeros((channels,), jnp.int32).at[chan].set(
        jnp.arange(channels, dtype=jnp.int32))
    w_kron = jnp.kron(w, jnp.eye(g, dtype=w.dtype))   # (C, C) in (s, g) basis
    return w_kron[inv][:, inv]                        # back to channel basis


# ----------------------------------------------------------------------------
# Module
# ----------------------------------------------------------------------------
class InvConvNear:
    """JAX/Pallas port of the PyTorch InvConvNear module (forward semantics)."""

    def __init__(self, channels, n_split=4, no_jacobian=False, *, key):
        assert n_split % 2 == 0
        assert channels % n_split == 0
        self.channels = channels
        self.n_split = n_split
        self.no_jacobian = no_jacobian
        # Deterministic init mirroring torch: QR of a normal matrix, flip sign
        # of the first column if det < 0 so det(W) = +1.
        w_init = jax.random.normal(key, (n_split, n_split), dtype=jnp.float32)
        q, _ = jnp.linalg.qr(w_init)
        q = jnp.where(jnp.linalg.det(q) < 0, q.at[:, 0].set(-q[:, 0]), q)
        self.weight = q
        self.weight_inv = None

    def store_inverse(self):
        self.weight_inv = jnp.linalg.inv(self.weight.astype(jnp.float32)).astype(
            self.weight.dtype)

    def __call__(self, x, x_mask=None, reverse=False):
        b, c, t = x.shape
        ns = self.n_split
        assert c % ns == 0

        if x_mask is None:
            mask3 = None
            x_len = jnp.ones((b,), dtype=x.dtype) * t
        else:
            # Pass the mask through without an extra HBM copy; only cast if it
            # is not already a floating type the VPU can multiply by.
            if jnp.issubdtype(x_mask.dtype, jnp.floating):
                mask3 = x_mask
            else:
                mask3 = x_mask.astype(jnp.float32)
            x_len = jnp.sum(mask3, axis=(1, 2)).astype(x.dtype)

        if reverse:
            if self.weight_inv is not None:
                weight = self.weight_inv
            else:
                weight = jnp.linalg.inv(self.weight.astype(jnp.float32)).astype(
                    self.weight.dtype)
            logdet = None
        else:
            weight = self.weight
            if self.no_jacobian:
                logdet = 0
            else:
                sign, logabsdet = jnp.linalg.slogdet(self.weight.astype(jnp.float32))
                # torch.logdet: NaN for det < 0, -inf for det == 0.
                logdet_w = jnp.where(sign < 0, jnp.nan, logabsdet)
                logdet = (logdet_w * (c / ns) * x_len).astype(x.dtype)

        # Dense (C, C) weight folding the split permutation; kept in f32 so the
        # MXU dot accumulates in full precision even for bf16/fp16 activations.
        w_full = _dense_weight(weight.astype(jnp.float32), c, ns)

        z = _invconv_apply(w_full, x, mask3)
        return z, logdet


# ----------------------------------------------------------------------------
# Self-test
# ----------------------------------------------------------------------------
def _ref_forward(weight, x, x_mask=None, n_split=4):
    """Pure-JAX reference mirroring the PyTorch grouped formulation."""
    b, c, t = x.shape
    g = c // n_split
    ns2 = n_split // 2
    xs = jnp.transpose(x.reshape(b, 2, g, ns2, t), (0, 1, 3, 2, 4)).reshape(
        b, n_split, g, t)
    zs = jnp.einsum("oi,bigt->bogt", weight, xs)
    z = jnp.transpose(zs.reshape(b, 2, ns2, g, t), (0, 1, 3, 2, 4)).reshape(b, c, t)
    if x_mask is not None:
        z = z * x_mask
    return z


if __name__ == "__main__":
    key = jax.random.PRNGKey(0)
    k_w, k_x, k_x2, k_x3 = jax.random.split(key, 4)

    B, C, T = 2, 8, 16
    module = InvConvNear(channels=C, n_split=4, key=k_w)

    # --- Test 1: masked forward, small T (single full-T lane tile). ----------
    x = jax.random.normal(k_x, (B, C, T), dtype=jnp.float32)
    lens = jnp.array([T, T // 2])
    x_mask = (jnp.arange(T)[None, None, :] < lens[:, None, None]).astype(jnp.float32)

    z, logdet = module(x, x_mask=x_mask, reverse=False)
    z = jax.block_until_ready(z)
    logdet = jax.block_until_ready(logdet)

    z_ref = _ref_forward(module.weight, x, x_mask)
    assert jnp.allclose(z, z_ref, atol=1e-5, rtol=1e-5)

    _, lad = jnp.linalg.slogdet(module.weight)
    logdet_ref = lad * (C / 4) * jnp.sum(x_mask, axis=(1, 2))
    assert jnp.allclose(logdet, logdet_ref, atol=1e-5, rtol=1e-5)

    # --- Test 2: reverse round-trip, unmasked path. ---------------------------
    z2, _ = module(x, x_mask=None, reverse=False)
    x_rec, _ = module(z2, x_mask=None, reverse=True)
    assert jnp.allclose(jax.block_until_ready(x_rec), x, atol=1e-4, rtol=1e-4)

    # --- Test 3: T not a multiple of the lane tile (partial last T-tile,
    #             no wrapper pad/slice), masked, B == 1 (forces T split). ------
    B3, T3 = 1, 200
    x3 = jax.random.normal(k_x2, (B3, C, T3), dtype=jnp.float32)
    m3 = (jnp.arange(T3)[None, None, :] < 150).astype(jnp.float32)
    z3, _ = module(x3, x_mask=m3, reverse=False)
    z3 = jax.block_until_ready(z3)
    z3_ref = _ref_forward(module.weight, x3, m3)
    assert jnp.allclose(z3, z3_ref, atol=1e-5, rtol=1e-5)

    # --- Test 4: batch-blocking path (BB > 1), unmasked. ----------------------
    B4 = 4
    x4 = jax.random.normal(k_x3, (B4, C, T), dtype=jnp.float32)
    z4, _ = module(x4, x_mask=None, reverse=False)
    z4 = jax.block_until_ready(z4)
    z4_ref = _ref_forward(module.weight, x4, None)
    assert jnp.allclose(z4, z4_ref, atol=1e-5, rtol=1e-5)

    print("KERNEL_OK")
</pallas_src>

<mosaic_0001>
module attributes {stable_mosaic.version = 11 : i64} {
  func.func @_invconv_masked_kernel(%arg0: i32, %arg1: i32, %arg2: memref<8x8xf32, #tpu.memory_space<vmem>>, %arg3: memref<1x8x16xf32, #tpu.memory_space<vmem>>, %arg4: memref<1x1x16xf32, #tpu.memory_space<vmem>>, %arg5: memref<1x8x16xf32, #tpu.memory_space<vmem>>) attributes {dimension_semantics = [#tpu.dimension_semantics<parallel>, #tpu.dimension_semantics<parallel>], iteration_bounds = array<i64: 2, 1>, scalar_prefetch = 0 : i64, scratch_operands = 0 : i64, tpu.core_type = #tpu.core_type<tc>, window_params = [{pipeline_mode = #tpu.pipeline_mode<synchronous>, transform_indices = @transform_0, window_bounds = array<i64: 8, 8>}, {transform_indices = @transform_1, window_bounds = array<i64: 1, 8, 16>}, {transform_indices = @transform_2, window_bounds = array<i64: 1, 1, 16>}, {transform_indices = @transform_3, window_bounds = array<i64: 1, 8, 16>}]} {
    %c0 = arith.constant 0 : index
    %c0_0 = arith.constant 0 : index
    %0 = vector.load %arg2[%c0, %c0_0] : memref<8x8xf32, #tpu.memory_space<vmem>>, vector<8x8xf32>
    %c0_1 = arith.constant 0 : index
    %c0_2 = arith.constant 0 : index
    %c0_3 = arith.constant 0 : index
    %1 = vector.load %arg3[%c0_1, %c0_2, %c0_3] : memref<1x8x16xf32, #tpu.memory_space<vmem>>, vector<1x8x16xf32>
    %2 = vector.shape_cast %1 : vector<1x8x16xf32> to vector<8x16xf32>
    %cst = arith.constant dense<0.000000e+00> : vector<8x16xf32>
    %3 = tpu.matmul %0, %2, %cst {dimension_numbers = #tpu.dot_dimension_numbers<[1], [0], [0], [1], [0, 0, 1, 1], [], []>} : vector<8x8xf32>, vector<8x16xf32>, vector<8x16xf32> -> vector<8x16xf32>
    %c0_4 = arith.constant 0 : index
    %c0_5 = arith.constant 0 : index
    %c0_6 = arith.constant 0 : index
    %4 = vector.load %arg4[%c0_4, %c0_5, %c0_6] : memref<1x1x16xf32, #tpu.memory_space<vmem>>, vector<1x1x16xf32>
    %5 = vector.shape_cast %4 : vector<1x1x16xf32> to vector<1x16xf32>
    %6 = vector.broadcast %5 : vector<1x16xf32> to vector<8x16xf32>
    %7 = arith.mulf %3, %6 : vector<8x16xf32>
    %c0_7 = arith.constant 0 : index
    %c0_8 = arith.constant 0 : index
    %c0_9 = arith.constant 0 : index
    %8 = vector.load %arg5[%c0_7, %c0_8, %c0_9] : memref<1x8x16xf32, #tpu.memory_space<vmem>>, vector<1x8x16xf32>
    %9 = vector.shape_cast %8 : vector<1x8x16xf32> to vector<8x16xf32>
    %10 = vector.shape_cast %7 : vector<8x16xf32> to vector<1x8x16xf32>
    tpu.vector_store %arg5[%c0_7, %c0_8, %c0_9], %10 {strides = array<i32>} : memref<1x8x16xf32, #tpu.memory_space<vmem>>, vector<1x8x16xf32>,
    return
  }
  func.func @transform_0(%arg0: i32, %arg1: i32) -> (i32, i32) {
    %c0_i32 = arith.constant 0 : i32
    %c0_i32_0 = arith.constant 0 : i32
    %c0_i32_1 = arith.constant 0 : i32
    return %c0_i32, %c0_i32_0 : i32, i32
  }
  func.func @transform_1(%arg0: i32, %arg1: i32) -> (i32, i32, i32) {
    %c0_i32 = arith.constant 0 : i32
    %c0_i32_0 = arith.constant 0 : i32
    return %arg0, %c0_i32, %arg1 : i32, i32, i32
  }
  func.func @transform_2(%arg0: i32, %arg1: i32) -> (i32, i32, i32) {
    %c0_i32 = arith.constant 0 : i32
    %c0_i32_0 = arith.constant 0 : i32
    return %arg0, %c0_i32, %arg1 : i32, i32, i32
  }
  func.func @transform_3(%arg0: i32, %arg1: i32) -> (i32, i32, i32) {
    %c0_i32 = arith.constant 0 : i32
    %c0_i32_0 = arith.constant 0 : i32
    return %arg0, %c0_i32, %arg1 : i32, i32, i32
  }
}

</mosaic_0001>

<bundles_post_ra>
// kernel: tpu_custom_call.1
= control target key start
LH: loop header
LB: loop body
LE: loop exit
PB: predicated region body
PF: predicated region fallthrough
CT: control target
= control target key end

     0   :  { %8 = vsyncpa [#allocation3], 0  ;;  %s882_s0 = inlined_call_operand.hbm [shape: f32[8,8], index: 0, kind: input, shape index: {}]   ;;  %s883_s1 = inlined_call_operand.hbm [shape: f32[2,8,16], index: 1, kind: input, shape index: {}]   ;;  %s884_s2 = inlined_call_operand.vmem [shape: f32[2,1,16], index: 2, kind: input, shape index: {}]   ;;  %s885_s3 = inlined_call_operand.hbm [shape: f32[2,8,16], index: 3, kind: output, shape index: {}]  }
   0x1   :  { %9 = vsyncpa [#allocation6], 0 }
   0x2   :  { %11 = vsyncpa [#allocation6 + $0x1], 0 }
   0x3   :  { %12 = vsyncpa [#allocation4], 0 }
   0x4   :  { %14 = vsyncpa [#allocation4 + $0x1], 0  ;;  %s710_s12 = smov 0   ;;  %s712_s13 = smov 0  }
   0x5   :  { %s714_s14 = smov 0   ;;  %s716_s15 = smov 0  }
   0x6   :  { %s718_s16 = smov 0   ;;  %s720_s17 = smov 0  }
   0x7 LB: > { %s446_s18 = sadd.s32 4294967295, %s683_s17   ;;  %s447_s19 = sadd.s32 4294967294, %s683_s17   ;;  %s683_s17 = sphi %s720_s17, %s20_s17   ;;  %s679_s16 = sphi %s718_s16, %s902_s16   ;;  %s675_s15 = sphi %s716_s15, %s901_s15   ;;  %s671_s14 = sphi %s714_s14, %s900_s14   ;;  %s667_s13 = sphi %s712_s13, %s899_s13   ;;  %s663_s12 = sphi %s710_s12, %s898_s12  }
   0x8   : > { %p75_p0 = scmp.ne.s32.totalorder %s667_s13, %s663_s12  ;;  %p744_p1 = scmp.eq.s32.totalorder %s446_s18, 0 }
   0x9   : > { %p748_p2 = scmp.eq.s32.totalorder %s446_s18, 1  ;;  %p135_p3 = scmp.eq.s32.totalorder %s447_s19, 1 }
   0xa   : > { %p754_p4 = por %p744_p1, %p75_p0  ;;  %p448_p5 = scmp.ge.s32.totalorder %s683_s17, 1 }
   0xb   : > { %p759_p6 = por %p135_p3, %p75_p0  ;;  %p142_p7 = scmp.lt.s32.totalorder %s683_s17, 3 }
   0xc   : > { %s889_s22 = scalar_select %p754_p4, 1, 0 }
   0xd   : > { %s890_s23 = scalar_select %p759_p6, 1, 0 }
   0xe   : > { %p764_p8 = pnand %p448_p5, %p142_p7  ;;  %s685_s25 = smov [#allocation2]  }
   0xf   : > { %s155_s26 = sshll.u32 %s685_s25, 4  ;;  %s32_s28 = sadd.s32 1, %s679_s16  ;;  %s156_s26 = int_to_ptr.vmem [resolvable:$true] %s155_s26 }
  0x10   : > { %p478_p10 = pneg %p764_p8  ;;  %s62_s29 = sadd.s32 1, %s671_s14 }
  0x11   : > { %p34_p12 = scmp.ge.s32.totalorder %s32_s28, 2  ;;  %s556_s30 = scalar_lea.vmem %s156_s26, 128 }
  0x12   : > { %p773_p11 = pnand %p478_p10, %p744_p1  ;;  %p557_p0 = scmp.ne.s32.totalorder %s156_s26, %s556_s30 }
  0x13   : > { %p564_p7 = scmp.lt.s32.totalorder %s156_s26, %s156_s26  ;;  %p565_p6 = scmp.lt.s32.totalorder %s556_s30, %s556_s30 }
  0x14   : > { %p547_p13 = pneg %p773_p11 }
  0x15   : > { %p566_p9 = por %p565_p6, %p564_p7 }
  0x16   : > { %p559_p3 = pnand %p557_p0, %p547_p13 }
  0x18   : > { %p560_p5 = pneg %p559_p3 }
  0x1a   : > { %p567_p4 = pnand %p566_p9, %p560_p5 }
  0x1c   : > { %570 = shalt.err (!%p567_p4)
}
  0x1d   : > { %481 = dma.hbm_to_vmem [thread:$0]  (!%p773_p11), %s882_s0, 128, %s156_s26, [#allocation3]  }
  0x1e   : > { %s904_s28 = smov (%p34_p12, %s32_s28), 0  ;;  %p69_p6 = scmp.ne.s32.totalorder %s671_s14, %s667_s13 }
  0x1f   : > { %p70_p4 = scmp.eq.s32.totalorder %s683_s17, 0  ;;  %s57_s6 = ssub.s32 %s679_s16, %s904_s28 }
  0x20   : > { %p491_p9 = scmp.lt.s32.totalorder %s683_s17, 2  ;;  %p60_p10 = scmp.eq.s32.totalorder %s57_s6, 0 }
  0x21   : > { %p71_p13 = por %p70_p4, %p69_p6  ;;  %p796_p0 = por %p748_p2, %p69_p6 }
  0x22   : > { %s166_s8 = sand.u32 1, %s671_s14   ;;  %s452_s11 = sshll.u32 %s679_s16, 7 }
  0x23   : > { %s802_s9 = scalar_select %p60_p10, %s671_s14, %s62_s29  }
  0x24   : > { %s451_s10 = sshll.u32 %s166_s8, 3  ;;  %s176_s25 = scalar_lea.hbm %s883_s1, %s452_s11 }
  0x25   : > { %s170_s26 = scalar_lea.vmem [#allocation5], %s451_s10  ;;  %p808_p11 = pnand %p491_p9, %p71_p13 }
  0x26   : > { %s178_s27 = sshll.u32 %s170_s26, 4  ;;  %s167_s21 = scalar_lea.sflag [#allocation6], %s166_s8  ;;  %s179_s27 = int_to_ptr.vmem [resolvable:$true] %s178_s27 }
  0x27   : > { %p573_p2 = pneg %p808_p11  ;;  %s584_s4 = scalar_lea.vmem %s179_s27, 128 }
  0x28   : > { %p585_p12 = scmp.ne.s32.totalorder %s179_s27, %s584_s4  ;;  %s686_s29 = smov [#allocation5]  }
  0x29   : > { %s589_s5 = sshll.u32 %s686_s29, 4  ;;  %s590_s5 = int_to_ptr.vmem [resolvable:$false] %s589_s5 }
  0x2a   : > { %p587_p3 = pnand %p585_p12, %p573_p2  ;;  %s591_s6 = scalar_lea.vmem %s590_s5, 256 }
  0x2b   : > { %p592_p7 = scmp.lt.s32.totalorder %s179_s27, %s590_s5  ;;  %p593_p6 = scmp.lt.s32.totalorder %s591_s6, %s584_s4 }
  0x2c   : > { %p588_p5 = pneg %p587_p3 }
  0x2d   : > { %p594_p4 = por %p593_p6, %p592_p7 }
  0x2f   : > { %p595_p10 = pnand %p594_p4, %p588_p5 }
  0x31   : > { %598 = shalt.err (!%p595_p10)
}
  0x32   : > { %485 = dma.hbm_to_vmem [thread:$0]  (!%p808_p11), %s176_s25, 128, %s179_s27, %s167_s21  }
  0x33   : > { %196 = sbr.rel (%p764_p8) target bundleno = 272 (0x110), region = 32 }
  0x38   : > { %650 = dma.done.wait (%p744_p1), [#allocation3], 128  }
  0x39   : > { %652 = vsyncadd (%p744_p1), [#allocation3], 4294967168  ;;  %s823_s8 = sand.u32 1, %s667_s13   ;;  %p895_p9 = scmp.ne.s32.totalorder %s889_s22, 0 }
  0x3a   : > { %s455_s10 = sshll.u32 %s823_s8, 3  ;;  %s203_s11 = scalar_lea.sflag [#allocation6], %s823_s8 }
  0x3b   : > { %s206_s18 = scalar_lea.vmem [#allocation5], %s455_s10 }
  0x3c   : > { %654 = dma.done.wait (%p895_p9), %s203_s11, 128  }
  0x3d   : > { %656 = vsyncadd (%p895_p9), %s203_s11, 4294967168  ;;  %v687_v0 = vmov 0.0   ;;  %vm688_vm0 = vmmov 0   ;;  %vm243_vm1 = vcmask 64512   ;;  %v242_v1 = vld [vmem:[%s206_s18] sm:$0xff]  ;;  %v241_v2 = vld [vmem:[#allocation2] sm:$0xff] }
  0x3e   : > { %465 = vmatprep.subr.mxu0 %v687_v0  ;;  %467 = vmatprep.mubr.msk.f32.mxu0 %vm688_vm0, %v687_v0  ;;  %p235_p1 = scmp.lt.s32.totalorder %s675_s15, 1  ;;  %s460_s25 = sshll.u32 %s675_s15, 7  ;;  %vm325_vm2 = vcmask 130048  }
  0x3f   : > { %466 = vmatpush3.msra.mxu0 %v242_v1  ;;  %s234_s26 = scalar_lea.vmem [#allocation7], %s455_s10  ;;  %s840_s4 = scalar_lea.hbm %s885_s3, %s460_s25 }
  0x40   : > { %468 = vmatmul.mubr.msk.f32.vlgmr.msra.gmra.mxu0 %vm243_vm1, %v241_v2  ;;  %s236_s20 = scalar_select %p235_p1, %s675_s15, 1 }
  0x41   : > { %s342_s27 = sshll.u32 %s234_s26, 4  ;;  %s328_s29 = scalar_lea.sflag [#allocation4], %s823_s8  ;;  %s343_s27 = int_to_ptr.vmem [resolvable:$true] %s342_s27 }
  0x42   : > { %s240_s22 = scalar_lea.vmem %s884_s2, %s236_s20  ;;  %s599_s5 = scalar_lea.vmem %s343_s27, 128 }
  0x43   : > { %v458_v3 = vld [vmem:[%s240_s22] ss:$0 sm:$0xff]  ;;  %p600_p8 = scmp.ne.s32.totalorder %s343_s27, %s599_s5  ;;  %s689_s15 = smov [#allocation7]  }
  0x44   : > { %s603_s6 = sshll.u32 %s689_s15, 4  ;;  %s604_s6 = int_to_ptr.vmem [resolvable:$false] %s603_s6 }
  0x45   : > { %p601_p13 = pnand %p600_p8, %p796_p0  ;;  %s605_s10 = scalar_lea.vmem %s604_s6, 256 }
  0x46   : > { %p606_p2 = scmp.lt.s32.totalorder %s343_s27, %s604_s6  ;;  %p607_p12 = scmp.lt.s32.totalorder %s605_s10, %s599_s5 }
  0x47   : > { %p602_p11 = pneg %p601_p13 }
  0x48   : > { %p608_p3 = por %p607_p12, %p606_p2 }
  0x4a   : > { %p609_p5 = pnand %p608_p3, %p602_p11 }
 0x100   : > { %v313_v4 = vpop.f32.mrf.mxu0 }
 0x101   : > { %v324_v5 = vmul.f32 %v458_v3, %v313_v4 }
 0x102   : > { %v469_v6 = vpop.f32.mrf.mxu0 }
 0x103   : > { %326 = vst.msk [vmem:[%s234_s26] sm:$0xff] %vm325_vm2, %v324_v5 }
 0x104   : > { %612 = shalt.err (!%p609_p5)
}
 0x105   : > { %s613_s11 = scalar_lea.hbm %s840_s4, 128  ;;  %s617_s20 = scalar_lea.hbm %s885_s3, 256 }
 0x106   : > { %p614_p7 = scmp.ne.s32.totalorder %s840_s4, %s613_s11  ;;  %p618_p10 = scmp.lt.s32.totalorder %s840_s4, %s885_s3 }
 0x107   : > { %p619_p9 = scmp.lt.s32.totalorder %s617_s20, %s613_s11 }
 0x108   : > { %p615_p6 = pnand %p614_p7, %p796_p0 }
 0x109   : > { %p620_p1 = por %p619_p9, %p618_p10 }
 0x10a   : > { %p616_p4 = pneg %p615_p6 }
 0x10c   : > { %p621_p8 = pnand %p620_p1, %p616_p4 }
 0x10e   : > { %624 = shalt.err (!%p621_p8)
}
 0x10f   : > { %476 = dma.vmem_to_hbm [thread:$0]  (%p796_p0), %s343_s27, 128, %s840_s4, %s328_s29  }
 0x110 PF: > { %s354_s22 = sand.u32 1, %s663_s12   ;;  %p896_p13 = scmp.ne.s32.totalorder %s890_s23, 0 }
 0x111   : > { %p897_p11 = scmp.ge.s32.totalorder %s683_s17, 2  ;;  %s355_s25 = scalar_lea.sflag [#allocation4], %s354_s22 }
 0x113   : > { %p487_p2 = pnand %p897_p11, %p896_p13 }
 0x115   : > { %p488_p12 = pneg %p487_p2 }
 0x117   : > { %658 = dma.done.wait (%p488_p12), %s355_s25, 128  }
 0x118   : > { %660 = vsyncadd (%p488_p12), %s355_s25, 4294967168  ;;  %s20_s17 = sadd.s32 1, %s683_s17   ;;  %s898_s12 = smov %s667_s13 }
 0x119   : > { %p17_p3 = scmp.ge.s32.totalorder %s20_s17, 4   ;;  %s899_s13 = smov %s671_s14 }
 0x11a   : > { %s900_s14 = smov %s802_s9  ;;  %s901_s15 = smov %s679_s16 }
 0x11b   : > { %s902_s16 = smov %s904_s28  ;;  %19 = sbr.rel (!%p17_p3) target bundleno = 7 (0x7), region = 85 }
 0x120   :  { %360 = vsyncpa [#allocation3], 1 }
 0x121   :  { %362 = vsyncpa [#allocation3 + $0x1], 1 }
 0x122   :  { %363 = vsyncpa [#allocation6], 1 }
 0x123   :  { %365 = vsyncpa [#allocation6 + $0x1], 1 }
 0x124   :  { %366 = vsyncpa [#allocation4], 1 }
 0x125   :  { %368 = vsyncpa [#allocation4 + $0x1], 1 }

</bundles_post_ra>
